<compile_context>
chip_gen: v7x
topology: tpu7x:2x2x1
jax: 0.10.0
libtpu: 0.0.40
codegen_flags: <defaults>
</compile_context>

<pallas_src>
import jax
import jax.numpy as jnp
from jax.experimental import pallas as pl
from jax.experimental.pallas import tpu as pltpu

INPUT_SIZE = 10
HIDDEN_SIZE = 20
OUTPUT_SIZE = 10
FUSED_COLS = HIDDEN_SIZE + OUTPUT_SIZE   # 30: cols [:20] = i2h, [20:30] = i2o
OUT_PAD = 128                            # lane-dense output width


def _rnn_fused_kernel(x_ref, wx_ref, wh_ref, b_ref, h0_ref,
                      out_ref, h_final_ref, xz_scr):
    """Whole-sequence RNN forward in one kernel invocation.

    x_ref:       (T*B, INPUT_SIZE)      all step inputs, flattened over time
    wx_ref:      (INPUT_SIZE, 30)       fused-weight rows multiplied by x
    wh_ref:      (HIDDEN_SIZE, 30)      fused-weight rows multiplied by h
    b_ref:       (1, 30)                fused bias  [b_i2h | b_i2o]
    h0_ref:      (B, HIDDEN_SIZE)       initial hidden state
    out_ref:     (T, B, OUT_PAD)        per-step log-softmax (first 10 lanes valid)
    h_final_ref: (B, HIDDEN_SIZE)       final hidden state
    xz_scr:      (T*B, 30)              VMEM scratch for the non-recurrent projection
    """
    T, B, _ = out_ref.shape

    # (1) Non-recurrent projection for ALL steps: one well-fed MXU pass + one
    #     bias broadcast (done once, not per step).
    xz_scr[...] = (
        jnp.dot(x_ref[...], wx_ref[...], preferred_element_type=jnp.float32)
        + b_ref[...]
    )

    # (2) Zero the lane-dense output slab once; pad lanes (10:128) stay 0.0.
    out_ref[...] = jnp.zeros(out_ref.shape, out_ref.dtype)

    wh = wh_ref[...]            # resident (20, 30)
    h = h0_ref[...]             # hidden carry lives in vregs, (B, 20)

    # (3) Serial recurrence, statically unrolled (T is small & static).
    #     Per step: one (B,20)@(20,30) MXU push + cheap VPU/EUP/XLU work.
    for t in range(T):
        z = xz_scr[t * B:(t + 1) * B, :] + jnp.dot(
            h, wh, preferred_element_type=jnp.float32)        # (B, 30)

        h = z[:, :HIDDEN_SIZE]                                 # (B, 20)
        logits = z[:, HIDDEN_SIZE:HIDDEN_SIZE + OUTPUT_SIZE]   # (B, 10)

        # Stable log-softmax over the 10 valid lanes.
        m = jnp.max(logits, axis=1, keepdims=True)
        zc = logits - m
        lse = jnp.log(jnp.sum(jnp.exp(zc), axis=1, keepdims=True))
        out_ref[t, :, :OUTPUT_SIZE] = zc - lse

    # (4) Final hidden state stored exactly once.
    h_final_ref[...] = h


def simple_rnn_sequence(xs, h0, params):
    """Run the RNN over a whole sequence in a single pallas_call.

    xs: (T, B, INPUT_SIZE), h0: (B, HIDDEN_SIZE)
    returns (outs, h_final) with outs: (T, B, OUTPUT_SIZE).
    """
    w_x, w_h, b = params
    T, B, _ = xs.shape
    x2d = xs.reshape(T * B, INPUT_SIZE)   # layout-free reshape in the wrapper

    out_pad, h_final = pl.pallas_call(
        _rnn_fused_kernel,
        grid=(1,),
        in_specs=[
            pl.BlockSpec((T * B, INPUT_SIZE), lambda i: (0, 0)),      # xs (one DMA)
            pl.BlockSpec((INPUT_SIZE, FUSED_COLS), lambda i: (0, 0)),  # W_x
            pl.BlockSpec((HIDDEN_SIZE, FUSED_COLS), lambda i: (0, 0)),  # W_h
            pl.BlockSpec((1, FUSED_COLS), lambda i: (0, 0)),           # b
            pl.BlockSpec((B, HIDDEN_SIZE), lambda i: (0, 0)),          # h0
        ],
        out_specs=(
            pl.BlockSpec((T, B, OUT_PAD), lambda i: (0, 0, 0)),        # one writeback
            pl.BlockSpec((B, HIDDEN_SIZE), lambda i: (0, 0)),
        ),
        out_shape=(
            jax.ShapeDtypeStruct((T, B, OUT_PAD), jnp.float32),
            jax.ShapeDtypeStruct((B, HIDDEN_SIZE), jnp.float32),
        ),
        scratch_shapes=[pltpu.VMEM((T * B, FUSED_COLS), jnp.float32)],
        compiler_params=pltpu.CompilerParams(
            dimension_semantics=("arbitrary",)),
    )(x2d, w_x, w_h, b, h0)

    return out_pad[:, :, :OUTPUT_SIZE], h_final


def simple_rnn_forward(x, h, params):
    """Single-step API matching SimpleRNN.forward(input, hidden)."""
    outs, h_new = simple_rnn_sequence(x[None], h, params)
    return outs[0], h_new


def init_params(key):
    """nn.Linear-style U(-1/sqrt(fan_in), .) init, stored fused & transposed.

    Fused weight columns: [:, :20] == i2h, [:, 20:30] == i2o.
    Rows are pre-split: rows [:10] multiply x, rows [10:30] multiply h, so the
    kernel never materializes concat([x, h]).
    """
    fan_in = INPUT_SIZE + HIDDEN_SIZE
    bound = 1.0 / jnp.sqrt(jnp.float32(fan_in))
    k1, k2 = jax.random.split(key, 2)
    w_cat = jax.random.uniform(k1, (fan_in, FUSED_COLS), jnp.float32, -bound, bound)
    b_cat = jax.random.uniform(k2, (1, FUSED_COLS), jnp.float32, -bound, bound)
    return w_cat[:INPUT_SIZE], w_cat[INPUT_SIZE:], b_cat


def init_hidden(batch=1):
    # mirrors rnn.initHidden() -> zeros(1, hidden_size), generalized over batch
    return jnp.zeros((batch, HIDDEN_SIZE), jnp.float32)


def _reference(xs, h0, params):
    """Pure-JAX reference: per-step SimpleRNN.forward applied over the sequence."""
    w_x, w_h, b = params

    def step(h, x):
        z = x @ w_x + h @ w_h + b          # == concat([x, h]) @ [W_i2h | W_i2o] + b
        new_h = z[:, :HIDDEN_SIZE]
        logits = z[:, HIDDEN_SIZE:]
        return new_h, jax.nn.log_softmax(logits, axis=1)

    h_final, outs = jax.lax.scan(step, h0, xs)
    return outs, h_final


if __name__ == "__main__":
    key = jax.random.PRNGKey(0)
    pkey, xkey = jax.random.split(key)
    params = init_params(pkey)

    T, B = 8, 8                     # seq=8, batch=8 (fills the 8-sublane dim)
    xs = jax.random.normal(xkey, (T, B, INPUT_SIZE), jnp.float32)
    h0 = init_hidden(B)

    # fused-sequence kernel
    outs, h_final = simple_rnn_sequence(xs, h0, params)
    outs, h_final = jax.block_until_ready((outs, h_final))

    ref_outs, ref_h = _reference(xs, h0, params)
    assert jnp.allclose(outs, ref_outs, atol=1e-5), "sequence output mismatch"
    assert jnp.allclose(h_final, ref_h, atol=1e-5), "final hidden mismatch"

    # single-step API (matches module.forward exactly)
    out1, h1 = simple_rnn_forward(xs[0], h0, params)
    out1, h1 = jax.block_until_ready((out1, h1))
    z0 = xs[0] @ params[0] + h0 @ params[1] + params[2]
    assert jnp.allclose(out1, ref_outs[0], atol=1e-5), "step output mismatch"
    assert jnp.allclose(h1, z0[:, :HIDDEN_SIZE], atol=1e-5), "step hidden mismatch"

    print("KERNEL_OK")
</pallas_src>

<mosaic_0001>
module attributes {stable_mosaic.version = 11 : i64} {
  func.func @_rnn_fused_kernel(%arg0: i32, %arg1: memref<64x10xf32, #tpu.memory_space<vmem>>, %arg2: memref<10x30xf32, #tpu.memory_space<vmem>>, %arg3: memref<20x30xf32, #tpu.memory_space<vmem>>, %arg4: memref<1x30xf32, #tpu.memory_space<vmem>>, %arg5: memref<8x20xf32, #tpu.memory_space<vmem>>, %arg6: memref<8x8x128xf32, #tpu.memory_space<vmem>>, %arg7: memref<8x20xf32, #tpu.memory_space<vmem>>, %arg8: memref<64x30xf32, #tpu.memory_space<vmem>>) attributes {dimension_semantics = [#tpu.dimension_semantics<arbitrary>], iteration_bounds = array<i64: 1>, scalar_prefetch = 0 : i64, scratch_operands = 1 : i64, tpu.core_type = #tpu.core_type<tc>, window_params = [{pipeline_mode = #tpu.pipeline_mode<synchronous>, transform_indices = @transform_0, window_bounds = array<i64: 64, 10>}, {pipeline_mode = #tpu.pipeline_mode<synchronous>, transform_indices = @transform_1, window_bounds = array<i64: 10, 30>}, {pipeline_mode = #tpu.pipeline_mode<synchronous>, transform_indices = @transform_2, window_bounds = array<i64: 20, 30>}, {pipeline_mode = #tpu.pipeline_mode<synchronous>, transform_indices = @transform_3, window_bounds = array<i64: 1, 30>}, {pipeline_mode = #tpu.pipeline_mode<synchronous>, transform_indices = @transform_4, window_bounds = array<i64: 8, 20>}, {pipeline_mode = #tpu.pipeline_mode<synchronous>, transform_indices = @transform_5, window_bounds = array<i64: 8, 8, 128>}, {pipeline_mode = #tpu.pipeline_mode<synchronous>, transform_indices = @transform_6, window_bounds = array<i64: 8, 20>}]} {
    %c0 = arith.constant 0 : index
    %c0_0 = arith.constant 0 : index
    %0 = vector.load %arg1[%c0, %c0_0] : memref<64x10xf32, #tpu.memory_space<vmem>>, vector<64x10xf32>
    %c0_1 = arith.constant 0 : index
    %c0_2 = arith.constant 0 : index
    %1 = vector.load %arg2[%c0_1, %c0_2] : memref<10x30xf32, #tpu.memory_space<vmem>>, vector<10x30xf32>
    %cst = arith.constant dense<0.000000e+00> : vector<64x30xf32>
    %2 = tpu.matmul %0, %1, %cst {dimension_numbers = #tpu.dot_dimension_numbers<[1], [0], [0], [1], [0, 0, 1, 1], [], []>} : vector<64x10xf32>, vector<10x30xf32>, vector<64x30xf32> -> vector<64x30xf32>
    %c0_3 = arith.constant 0 : index
    %c0_4 = arith.constant 0 : index
    %3 = vector.load %arg4[%c0_3, %c0_4] : memref<1x30xf32, #tpu.memory_space<vmem>>, vector<1x30xf32>
    %4 = vector.broadcast %3 : vector<1x30xf32> to vector<64x30xf32>
    %5 = arith.addf %2, %4 : vector<64x30xf32>
    %c0_5 = arith.constant 0 : index
    %c0_6 = arith.constant 0 : index
    %6 = vector.load %arg8[%c0_5, %c0_6] : memref<64x30xf32, #tpu.memory_space<vmem>>, vector<64x30xf32>
    tpu.vector_store %arg8[%c0_5, %c0_6], %5 {strides = array<i32>} : memref<64x30xf32, #tpu.memory_space<vmem>>, vector<64x30xf32>,
    %cst_7 = arith.constant 0.000000e+00 : f32
    %7 = vector.broadcast %cst_7 : f32 to vector<8x8x128xf32>
    %c0_8 = arith.constant 0 : index
    %c0_9 = arith.constant 0 : index
    %c0_10 = arith.constant 0 : index
    %8 = vector.load %arg6[%c0_8, %c0_9, %c0_10] : memref<8x8x128xf32, #tpu.memory_space<vmem>>, vector<8x8x128xf32>
    tpu.vector_store %arg6[%c0_8, %c0_9, %c0_10], %7 {strides = array<i32>} : memref<8x8x128xf32, #tpu.memory_space<vmem>>, vector<8x8x128xf32>,
    %c0_11 = arith.constant 0 : index
    %c0_12 = arith.constant 0 : index
    %9 = vector.load %arg3[%c0_11, %c0_12] : memref<20x30xf32, #tpu.memory_space<vmem>>, vector<20x30xf32>
    %c0_13 = arith.constant 0 : index
    %c0_14 = arith.constant 0 : index
    %10 = vector.load %arg5[%c0_13, %c0_14] : memref<8x20xf32, #tpu.memory_space<vmem>>, vector<8x20xf32>
    %c0_15 = arith.constant 0 : index
    %c0_16 = arith.constant 0 : index
    %11 = vector.load %arg8[%c0_15, %c0_16] : memref<64x30xf32, #tpu.memory_space<vmem>>, vector<8x30xf32>
    %cst_17 = arith.constant dense<0.000000e+00> : vector<8x30xf32>
    %12 = tpu.matmul %10, %9, %cst_17 {dimension_numbers = #tpu.dot_dimension_numbers<[1], [0], [0], [1], [0, 0, 1, 1], [], []>} : vector<8x20xf32>, vector<20x30xf32>, vector<8x30xf32> -> vector<8x30xf32>
    %13 = arith.addf %11, %12 : vector<8x30xf32>
    %14 = vector.extract_strided_slice %13 {offsets = [0, 0], sizes = [8, 20], strides = [1, 1]} : vector<8x30xf32> to vector<8x20xf32>
    %15 = vector.extract_strided_slice %13 {offsets = [0, 20], sizes = [8, 10], strides = [1, 1]} : vector<8x30xf32> to vector<8x10xf32>
    %cst_18 = arith.constant dense<0xFF800000> : vector<8xf32>
    %16 = vector.multi_reduction <maximumf>, %15, %cst_18 [1] : vector<8x10xf32> to vector<8xf32>
    %17 = vector.shape_cast %16 : vector<8xf32> to vector<8x1xf32>
    %18 = vector.broadcast %17 : vector<8x1xf32> to vector<8x10xf32>
    %19 = arith.subf %15, %18 : vector<8x10xf32>
    %20 = math.exp %19 : vector<8x10xf32>
    %cst_19 = arith.constant dense<0.000000e+00> : vector<8xf32>
    %21 = vector.multi_reduction <add>, %20, %cst_19 [1] : vector<8x10xf32> to vector<8xf32>
    %22 = vector.shape_cast %21 : vector<8xf32> to vector<8x1xf32>
    %23 = math.log %22 : vector<8x1xf32>
    %24 = vector.broadcast %23 : vector<8x1xf32> to vector<8x10xf32>
    %25 = arith.subf %19, %24 : vector<8x10xf32>
    %c0_20 = arith.constant 0 : index
    %c0_21 = arith.constant 0 : index
    %c0_22 = arith.constant 0 : index
    %26 = vector.load %arg6[%c0_20, %c0_21, %c0_22] : memref<8x8x128xf32, #tpu.memory_space<vmem>>, vector<1x8x10xf32>
    %27 = vector.shape_cast %26 : vector<1x8x10xf32> to vector<8x10xf32>
    %28 = vector.shape_cast %25 : vector<8x10xf32> to vector<1x8x10xf32>
    tpu.vector_store %arg6[%c0_20, %c0_21, %c0_22], %28 {strides = array<i32>} : memref<8x8x128xf32, #tpu.memory_space<vmem>>, vector<1x8x10xf32>,
    %c8 = arith.constant 8 : index
    %c0_23 = arith.constant 0 : index
    %29 = vector.load %arg8[%c8, %c0_23] : memref<64x30xf32, #tpu.memory_space<vmem>>, vector<8x30xf32>
    %cst_24 = arith.constant dense<0.000000e+00> : vector<8x30xf32>
    %30 = tpu.matmul %14, %9, %cst_24 {dimension_numbers = #tpu.dot_dimension_numbers<[1], [0], [0], [1], [0, 0, 1, 1], [], []>} : vector<8x20xf32>, vector<20x30xf32>, vector<8x30xf32> -> vector<8x30xf32>
    %31 = arith.addf %29, %30 : vector<8x30xf32>
    %32 = vector.extract_strided_slice %31 {offsets = [0, 0], sizes = [8, 20], strides = [1, 1]} : vector<8x30xf32> to vector<8x20xf32>
    %33 = vector.extract_strided_slice %31 {offsets = [0, 20], sizes = [8, 10], strides = [1, 1]} : vector<8x30xf32> to vector<8x10xf32>
    %cst_25 = arith.constant dense<0xFF800000> : vector<8xf32>
    %34 = vector.multi_reduction <maximumf>, %33, %cst_25 [1] : vector<8x10xf32> to vector<8xf32>
    %35 = vector.shape_cast %34 : vector<8xf32> to vector<8x1xf32>
    %36 = vector.broadcast %35 : vector<8x1xf32> to vector<8x10xf32>
    %37 = arith.subf %33, %36 : vector<8x10xf32>
    %38 = math.exp %37 : vector<8x10xf32>
    %cst_26 = arith.constant dense<0.000000e+00> : vector<8xf32>
    %39 = vector.multi_reduction <add>, %38, %cst_26 [1] : vector<8x10xf32> to vector<8xf32>
    %40 = vector.shape_cast %39 : vector<8xf32> to vector<8x1xf32>
    %41 = math.log %40 : vector<8x1xf32>
    %42 = vector.broadcast %41 : vector<8x1xf32> to vector<8x10xf32>
    %43 = arith.subf %37, %42 : vector<8x10xf32>
    %c1 = arith.constant 1 : index
    %c0_27 = arith.constant 0 : index
    %c0_28 = arith.constant 0 : index
    %44 = vector.load %arg6[%c1, %c0_27, %c0_28] : memref<8x8x128xf32, #tpu.memory_space<vmem>>, vector<1x8x10xf32>
    %45 = vector.shape_cast %44 : vector<1x8x10xf32> to vector<8x10xf32>
    %46 = vector.shape_cast %43 : vector<8x10xf32> to vector<1x8x10xf32>
    tpu.vector_store %arg6[%c1, %c0_27, %c0_28], %46 {strides = array<i32>} : memref<8x8x128xf32, #tpu.memory_space<vmem>>, vector<1x8x10xf32>,
    %c16 = arith.constant 16 : index
    %c0_29 = arith.constant 0 : index
    %47 = vector.load %arg8[%c16, %c0_29] : memref<64x30xf32, #tpu.memory_space<vmem>>, vector<8x30xf32>
    %cst_30 = arith.constant dense<0.000000e+00> : vector<8x30xf32>
    %48 = tpu.matmul %32, %9, %cst_30 {dimension_numbers = #tpu.dot_dimension_numbers<[1], [0], [0], [1], [0, 0, 1, 1], [], []>} : vector<8x20xf32>, vector<20x30xf32>, vector<8x30xf32> -> vector<8x30xf32>
    %49 = arith.addf %47, %48 : vector<8x30xf32>
    %50 = vector.extract_strided_slice %49 {offsets = [0, 0], sizes = [8, 20], strides = [1, 1]} : vector<8x30xf32> to vector<8x20xf32>
    %51 = vector.extract_strided_slice %49 {offsets = [0, 20], sizes = [8, 10], strides = [1, 1]} : vector<8x30xf32> to vector<8x10xf32>
    %cst_31 = arith.constant dense<0xFF800000> : vector<8xf32>
    %52 = vector.multi_reduction <maximumf>, %51, %cst_31 [1] : vector<8x10xf32> to vector<8xf32>
    %53 = vector.shape_cast %52 : vector<8xf32> to vector<8x1xf32>
    %54 = vector.broadcast %53 : vector<8x1xf32> to vector<8x10xf32>
    %55 = arith.subf %51, %54 : vector<8x10xf32>
    %56 = math.exp %55 : vector<8x10xf32>
    %cst_32 = arith.constant dense<0.000000e+00> : vector<8xf32>
    %57 = vector.multi_reduction <add>, %56, %cst_32 [1] : vector<8x10xf32> to vector<8xf32>
    %58 = vector.shape_cast %57 : vector<8xf32> to vector<8x1xf32>
    %59 = math.log %58 : vector<8x1xf32>
    %60 = vector.broadcast %59 : vector<8x1xf32> to vector<8x10xf32>
    %61 = arith.subf %55, %60 : vector<8x10xf32>
    %c2 = arith.constant 2 : index
    %c0_33 = arith.constant 0 : index
    %c0_34 = arith.constant 0 : index
    %62 = vector.load %arg6[%c2, %c0_33, %c0_34] : memref<8x8x128xf32, #tpu.memory_space<vmem>>, vector<1x8x10xf32>
    %63 = vector.shape_cast %62 : vector<1x8x10xf32> to vector<8x10xf32>
    %64 = vector.shape_cast %61 : vector<8x10xf32> to vector<1x8x10xf32>
    tpu.vector_store %arg6[%c2, %c0_33, %c0_34], %64 {strides = array<i32>} : memref<8x8x128xf32, #tpu.memory_space<vmem>>, vector<1x8x10xf32>,
    %c24 = arith.constant 24 : index
    %c0_35 = arith.constant 0 : index
    %65 = vector.load %arg8[%c24, %c0_35] : memref<64x30xf32, #tpu.memory_space<vmem>>, vector<8x30xf32>
    %cst_36 = arith.constant dense<0.000000e+00> : vector<8x30xf32>
    %66 = tpu.matmul %50, %9, %cst_36 {dimension_numbers = #tpu.dot_dimension_numbers<[1], [0], [0], [1], [0, 0, 1, 1], [], []>} : vector<8x20xf32>, vector<20x30xf32>, vector<8x30xf32> -> vector<8x30xf32>
    %67 = arith.addf %65, %66 : vector<8x30xf32>
    %68 = vector.extract_strided_slice %67 {offsets = [0, 0], sizes = [8, 20], strides = [1, 1]} : vector<8x30xf32> to vector<8x20xf32>
    %69 = vector.extract_strided_slice %67 {offsets = [0, 20], sizes = [8, 10], strides = [1, 1]} : vector<8x30xf32> to vector<8x10xf32>
    %cst_37 = arith.constant dense<0xFF800000> : vector<8xf32>
    %70 = vector.multi_reduction <maximumf>, %69, %cst_37 [1] : vector<8x10xf32> to vector<8xf32>
    %71 = vector.shape_cast %70 : vector<8xf32> to vector<8x1xf32>
    %72 = vector.broadcast %71 : vector<8x1xf32> to vector<8x10xf32>
    %73 = arith.subf %69, %72 : vector<8x10xf32>
    %74 = math.exp %73 : vector<8x10xf32>
    %cst_38 = arith.constant dense<0.000000e+00> : vector<8xf32>
    %75 = vector.multi_reduction <add>, %74, %cst_38 [1] : vector<8x10xf32> to vector<8xf32>
    %76 = vector.shape_cast %75 : vector<8xf32> to vector<8x1xf32>
    %77 = math.log %76 : vector<8x1xf32>
    %78 = vector.broadcast %77 : vector<8x1xf32> to vector<8x10xf32>
    %79 = arith.subf %73, %78 : vector<8x10xf32>
    %c3 = arith.constant 3 : index
    %c0_39 = arith.constant 0 : index
    %c0_40 = arith.constant 0 : index
    %80 = vector.load %arg6[%c3, %c0_39, %c0_40] : memref<8x8x128xf32, #tpu.memory_space<vmem>>, vector<1x8x10xf32>
    %81 = vector.shape_cast %80 : vector<1x8x10xf32> to vector<8x10xf32>
    %82 = vector.shape_cast %79 : vector<8x10xf32> to vector<1x8x10xf32>
    tpu.vector_store %arg6[%c3, %c0_39, %c0_40], %82 {strides = array<i32>} : memref<8x8x128xf32, #tpu.memory_space<vmem>>, vector<1x8x10xf32>,
    %c32 = arith.constant 32 : index
    %c0_41 = arith.constant 0 : index
    %83 = vector.load %arg8[%c32, %c0_41] : memref<64x30xf32, #tpu.memory_space<vmem>>, vector<8x30xf32>
    %cst_42 = arith.constant dense<0.000000e+00> : vector<8x30xf32>
    %84 = tpu.matmul %68, %9, %cst_42 {dimension_numbers = #tpu.dot_dimension_numbers<[1], [0], [0], [1], [0, 0, 1, 1], [], []>} : vector<8x20xf32>, vector<20x30xf32>, vector<8x30xf32> -> vector<8x30xf32>
    %85 = arith.addf %83, %84 : vector<8x30xf32>
    %86 = vector.extract_strided_slice %85 {offsets = [0, 0], sizes = [8, 20], strides = [1, 1]} : vector<8x30xf32> to vector<8x20xf32>
    %87 = vector.extract_strided_slice %85 {offsets = [0, 20], sizes = [8, 10], strides = [1, 1]} : vector<8x30xf32> to vector<8x10xf32>
    %cst_43 = arith.constant dense<0xFF800000> : vector<8xf32>
    %88 = vector.multi_reduction <maximumf>, %87, %cst_43 [1] : vector<8x10xf32> to vector<8xf32>
    %89 = vector.shape_cast %88 : vector<8xf32> to vector<8x1xf32>
    %90 = vector.broadcast %89 : vector<8x1xf32> to vector<8x10xf32>
    %91 = arith.subf %87, %90 : vector<8x10xf32>
    %92 = math.exp %91 : vector<8x10xf32>
    %cst_44 = arith.constant dense<0.000000e+00> : vector<8xf32>
    %93 = vector.multi_reduction <add>, %92, %cst_44 [1] : vector<8x10xf32> to vector<8xf32>
    %94 = vector.shape_cast %93 : vector<8xf32> to vector<8x1xf32>
    %95 = math.log %94 : vector<8x1xf32>
    %96 = vector.broadcast %95 : vector<8x1xf32> to vector<8x10xf32>
    %97 = arith.subf %91, %96 : vector<8x10xf32>
    %c4 = arith.constant 4 : index
    %c0_45 = arith.constant 0 : index
    %c0_46 = arith.constant 0 : index
    %98 = vector.load %arg6[%c4, %c0_45, %c0_46] : memref<8x8x128xf32, #tpu.memory_space<vmem>>, vector<1x8x10xf32>
    %99 = vector.shape_cast %98 : vector<1x8x10xf32> to vector<8x10xf32>
    %100 = vector.shape_cast %97 : vector<8x10xf32> to vector<1x8x10xf32>
    tpu.vector_store %arg6[%c4, %c0_45, %c0_46], %100 {strides = array<i32>} : memref<8x8x128xf32, #tpu.memory_space<vmem>>, vector<1x8x10xf32>,
    %c40 = arith.constant 40 : index
    %c0_47 = arith.constant 0 : index
    %101 = vector.load %arg8[%c40, %c0_47] : memref<64x30xf32, #tpu.memory_space<vmem>>, vector<8x30xf32>
    %cst_48 = arith.constant dense<0.000000e+00> : vector<8x30xf32>
    %102 = tpu.matmul %86, %9, %cst_48 {dimension_numbers = #tpu.dot_dimension_numbers<[1], [0], [0], [1], [0, 0, 1, 1], [], []>} : vector<8x20xf32>, vector<20x30xf32>, vector<8x30xf32> -> vector<8x30xf32>
    %103 = arith.addf %101, %102 : vector<8x30xf32>
    %104 = vector.extract_strided_slice %103 {offsets = [0, 0], sizes = [8, 20], strides = [1, 1]} : vector<8x30xf32> to vector<8x20xf32>
    %105 = vector.extract_strided_slice %103 {offsets = [0, 20], sizes = [8, 10], strides = [1, 1]} : vector<8x30xf32> to vector<8x10xf32>
    %cst_49 = arith.constant dense<0xFF800000> : vector<8xf32>
    %106 = vector.multi_reduction <maximumf>, %105, %cst_49 [1] : vector<8x10xf32> to vector<8xf32>
    %107 = vector.shape_cast %106 : vector<8xf32> to vector<8x1xf32>
    %108 = vector.broadcast %107 : vector<8x1xf32> to vector<8x10xf32>
    %109 = arith.subf %105, %108 : vector<8x10xf32>
    %110 = math.exp %109 : vector<8x10xf32>
    %cst_50 = arith.constant dense<0.000000e+00> : vector<8xf32>
    %111 = vector.multi_reduction <add>, %110, %cst_50 [1] : vector<8x10xf32> to vector<8xf32>
    %112 = vector.shape_cast %111 : vector<8xf32> to vector<8x1xf32>
    %113 = math.log %112 : vector<8x1xf32>
    %114 = vector.broadcast %113 : vector<8x1xf32> to vector<8x10xf32>
    %115 = arith.subf %109, %114 : vector<8x10xf32>
    %c5 = arith.constant 5 : index
    %c0_51 = arith.constant 0 : index
    %c0_52 = arith.constant 0 : index
    %116 = vector.load %arg6[%c5, %c0_51, %c0_52] : memref<8x8x128xf32, #tpu.memory_space<vmem>>, vector<1x8x10xf32>
    %117 = vector.shape_cast %116 : vector<1x8x10xf32> to vector<8x10xf32>
    %118 = vector.shape_cast %115 : vector<8x10xf32> to vector<1x8x10xf32>
    tpu.vector_store %arg6[%c5, %c0_51, %c0_52], %118 {strides = array<i32>} : memref<8x8x128xf32, #tpu.memory_space<vmem>>, vector<1x8x10xf32>,
    %c48 = arith.constant 48 : index
    %c0_53 = arith.constant 0 : index
    %119 = vector.load %arg8[%c48, %c0_53] : memref<64x30xf32, #tpu.memory_space<vmem>>, vector<8x30xf32>
    %cst_54 = arith.constant dense<0.000000e+00> : vector<8x30xf32>
    %120 = tpu.matmul %104, %9, %cst_54 {dimension_numbers = #tpu.dot_dimension_numbers<[1], [0], [0], [1], [0, 0, 1, 1], [], []>} : vector<8x20xf32>, vector<20x30xf32>, vector<8x30xf32> -> vector<8x30xf32>
    %121 = arith.addf %119, %120 : vector<8x30xf32>
    %122 = vector.extract_strided_slice %121 {offsets = [0, 0], sizes = [8, 20], strides = [1, 1]} : vector<8x30xf32> to vector<8x20xf32>
    %123 = vector.extract_strided_slice %121 {offsets = [0, 20], sizes = [8, 10], strides = [1, 1]} : vector<8x30xf32> to vector<8x10xf32>
    %cst_55 = arith.constant dense<0xFF800000> : vector<8xf32>
    %124 = vector.multi_reduction <maximumf>, %123, %cst_55 [1] : vector<8x10xf32> to vector<8xf32>
    %125 = vector.shape_cast %124 : vector<8xf32> to vector<8x1xf32>
    %126 = vector.broadcast %125 : vector<8x1xf32> to vector<8x10xf32>
    %127 = arith.subf %123, %126 : vector<8x10xf32>
    %128 = math.exp %127 : vector<8x10xf32>
    %cst_56 = arith.constant dense<0.000000e+00> : vector<8xf32>
    %129 = vector.multi_reduction <add>, %128, %cst_56 [1] : vector<8x10xf32> to vector<8xf32>
    %130 = vector.shape_cast %129 : vector<8xf32> to vector<8x1xf32>
    %131 = math.log %130 : vector<8x1xf32>
    %132 = vector.broadcast %131 : vector<8x1xf32> to vector<8x10xf32>
    %133 = arith.subf %127, %132 : vector<8x10xf32>
    %c6 = arith.constant 6 : index
    %c0_57 = arith.constant 0 : index
    %c0_58 = arith.constant 0 : index
    %134 = vector.load %arg6[%c6, %c0_57, %c0_58] : memref<8x8x128xf32, #tpu.memory_space<vmem>>, vector<1x8x10xf32>
    %135 = vector.shape_cast %134 : vector<1x8x10xf32> to vector<8x10xf32>
    %136 = vector.shape_cast %133 : vector<8x10xf32> to vector<1x8x10xf32>
    tpu.vector_store %arg6[%c6, %c0_57, %c0_58], %136 {strides = array<i32>} : memref<8x8x128xf32, #tpu.memory_space<vmem>>, vector<1x8x10xf32>,
    %c56 = arith.constant 56 : index
    %c0_59 = arith.constant 0 : index
    %137 = vector.load %arg8[%c56, %c0_59] : memref<64x30xf32, #tpu.memory_space<vmem>>, vector<8x30xf32>
    %cst_60 = arith.constant dense<0.000000e+00> : vector<8x30xf32>
    %138 = tpu.matmul %122, %9, %cst_60 {dimension_numbers = #tpu.dot_dimension_numbers<[1], [0], [0], [1], [0, 0, 1, 1], [], []>} : vector<8x20xf32>, vector<20x30xf32>, vector<8x30xf32> -> vector<8x30xf32>
    %139 = arith.addf %137, %138 : vector<8x30xf32>
    %140 = vector.extract_strided_slice %139 {offsets = [0, 0], sizes = [8, 20], strides = [1, 1]} : vector<8x30xf32> to vector<8x20xf32>
    %141 = vector.extract_strided_slice %139 {offsets = [0, 20], sizes = [8, 10], strides = [1, 1]} : vector<8x30xf32> to vector<8x10xf32>
    %cst_61 = arith.constant dense<0xFF800000> : vector<8xf32>
    %142 = vector.multi_reduction <maximumf>, %141, %cst_61 [1] : vector<8x10xf32> to vector<8xf32>
    %143 = vector.shape_cast %142 : vector<8xf32> to vector<8x1xf32>
    %144 = vector.broadcast %143 : vector<8x1xf32> to vector<8x10xf32>
    %145 = arith.subf %141, %144 : vector<8x10xf32>
    %146 = math.exp %145 : vector<8x10xf32>
    %cst_62 = arith.constant dense<0.000000e+00> : vector<8xf32>
    %147 = vector.multi_reduction <add>, %146, %cst_62 [1] : vector<8x10xf32> to vector<8xf32>
    %148 = vector.shape_cast %147 : vector<8xf32> to vector<8x1xf32>
    %149 = math.log %148 : vector<8x1xf32>
    %150 = vector.broadcast %149 : vector<8x1xf32> to vector<8x10xf32>
    %151 = arith.subf %145, %150 : vector<8x10xf32>
    %c7 = arith.constant 7 : index
    %c0_63 = arith.constant 0 : index
    %c0_64 = arith.constant 0 : index
    %152 = vector.load %arg6[%c7, %c0_63, %c0_64] : memref<8x8x128xf32, #tpu.memory_space<vmem>>, vector<1x8x10xf32>
    %153 = vector.shape_cast %152 : vector<1x8x10xf32> to vector<8x10xf32>
    %154 = vector.shape_cast %151 : vector<8x10xf32> to vector<1x8x10xf32>
    tpu.vector_store %arg6[%c7, %c0_63, %c0_64], %154 {strides = array<i32>} : memref<8x8x128xf32, #tpu.memory_space<vmem>>, vector<1x8x10xf32>,
    %c0_65 = arith.constant 0 : index
    %c0_66 = arith.constant 0 : index
    %155 = vector.load %arg7[%c0_65, %c0_66] : memref<8x20xf32, #tpu.memory_space<vmem>>, vector<8x20xf32>
    tpu.vector_store %arg7[%c0_65, %c0_66], %140 {strides = array<i32>} : memref<8x20xf32, #tpu.memory_space<vmem>>, vector<8x20xf32>,
    return
  }
  func.func @transform_0(%arg0: i32) -> (i32, i32) {
    %c0_i32 = arith.constant 0 : i32
    %c0_i32_0 = arith.constant 0 : i32
    %c0_i32_1 = arith.constant 0 : i32
    return %c0_i32, %c0_i32_0 : i32, i32
  }
  func.func @transform_1(%arg0: i32) -> (i32, i32) {
    %c0_i32 = arith.constant 0 : i32
    %c0_i32_0 = arith.constant 0 : i32
    %c0_i32_1 = arith.constant 0 : i32
    return %c0_i32, %c0_i32_0 : i32, i32
  }
  func.func @transform_2(%arg0: i32) -> (i32, i32) {
    %c0_i32 = arith.constant 0 : i32
    %c0_i32_0 = arith.constant 0 : i32
    %c0_i32_1 = arith.constant 0 : i32
    return %c0_i32, %c0_i32_0 : i32, i32
  }
  func.func @transform_3(%arg0: i32) -> (i32, i32) {
    %c0_i32 = arith.constant 0 : i32
    %c0_i32_0 = arith.constant 0 : i32
    %c0_i32_1 = arith.constant 0 : i32
    return %c0_i32, %c0_i32_0 : i32, i32
  }
  func.func @transform_4(%arg0: i32) -> (i32, i32) {
    %c0_i32 = arith.constant 0 : i32
    %c0_i32_0 = arith.constant 0 : i32
    %c0_i32_1 = arith.constant 0 : i32
    return %c0_i32, %c0_i32_0 : i32, i32
  }
  func.func @transform_5(%arg0: i32) -> (i32, i32, i32) {
    %c0_i32 = arith.constant 0 : i32
    %c0_i32_0 = arith.constant 0 : i32
    %c0_i32_1 = arith.constant 0 : i32
    %c0_i32_2 = arith.constant 0 : i32
    return %c0_i32, %c0_i32_0, %c0_i32_1 : i32, i32, i32
  }
  func.func @transform_6(%arg0: i32) -> (i32, i32) {
    %c0_i32 = arith.constant 0 : i32
    %c0_i32_0 = arith.constant 0 : i32
    %c0_i32_1 = arith.constant 0 : i32
    return %c0_i32, %c0_i32_0 : i32, i32
  }
}

</mosaic_0001>

<bundles_post_ra>
// kernel: tpu_custom_call.1
= control target key start
LH: loop header
LB: loop body
LE: loop exit
PB: predicated region body
PF: predicated region fallthrough
CT: control target
= control target key end

     0   :  { %12 = vsyncpa [#allocation4], 0  ;;  %vm66_vm0 = vcmask 1041408   ;;  %vm1283_vm1 = vmmov 1   ;;  %vm41_vm3 = vcmask 80896   ;;  %v1284_v6 = vmov 0.0|0.0   ;;  %s1547_s0 = inlined_call_operand.vmem [shape: f32[64,10], index: 0, kind: input, shape index: {}]   ;;  %s1548_s1 = inlined_call_operand.vmem [shape: f32[10,30], index: 1, kind: input, shape index: {}]   ;;  %s1549_s2 = inlined_call_operand.vmem [shape: f32[20,30], index: 2, kind: input, shape index: {}]   ;;  %s1550_s3 = inlined_call_operand.vmem [shape: f32[1,30], index: 3, kind: input, shape index: {}]   ;;  %s1551_s4 = inlined_call_operand.vmem [shape: f32[8,20], index: 4, kind: input, shape index: {}]   ;;  %s1552_s5 = inlined_call_operand.hbm [shape: f32[8,8,128], index: 5, kind: output, shape index: {0}]   ;;  %s1553_s6 = inlined_call_operand.hbm [shape: f32[8,20], index: 6, kind: output, shape index: {1}]  }
   0x1   :  { %v32_v0 = vld [vmem:[%s1548_s1] sm:$0xff]  ;;  %v33_v1 = vld [vmem:[%s1548_s1 + $0x8] sm:$0x3]  ;;  %vm1336_vm2 = vmpackc.low %vm66_vm0, %vm1283_vm1  ;;  %1170 = vmatprep.subr.bf16.mxu1 %v1284_v6  ;;  %v1285_v8 = vmov 0.0   ;;  %vm1286_vm4 = vmmov 0  }
   0x2   :  { %v24_v2 = vld [vmem:[%s1547_s0] sm:$0xff]  ;;  %v1164_v3 = vpack.c.bf16 %v33_v1, %v32_v0  ;;  %v193_v7 = vld [vmem:[%s1549_s2 + $0x8] sm:$0xff]  ;;  %184 = vst [vmem:[#allocation3] sm:$0xff] %v1285_v8  ;;  %185 = vst [vmem:[#allocation3 + $0x8] sm:$0xff] %v1285_v8  ;;  %1098 = vmatprep.mubr.msk.f32.mxu1 %vm1286_vm4, %v1285_v8 }
   0x3   :  { %v192_v5 = vld [vmem:[%s1549_s2] sm:$0xff]  ;;  %1080 = vmatprep.mubr.msk.f32.mxu0 %vm41_vm3, %v24_v2  ;;  %186 = vst [vmem:[#allocation3 + $0x10] sm:$0xff] %v1285_v8  ;;  %187 = vst [vmem:[#allocation3 + $0x18] sm:$0xff] %v1285_v8 }
   0x4   :  { %188 = vst [vmem:[#allocation3 + $0x20] sm:$0xff] %v1285_v8  ;;  %189 = vst [vmem:[#allocation3 + $0x28] sm:$0xff] %v1285_v8  ;;  %1166 = vmatprep.subr.msk.bf16.mxu0 %vm1336_vm2, %v1164_v3  ;;  %v1358_v9 = vpack.c.bf16 %v193_v7, %v192_v5 }
   0x5   :  { %190 = vst [vmem:[#allocation3 + $0x30] sm:$0xff] %v1285_v8  ;;  %191 = vst [vmem:[#allocation3 + $0x38] sm:$0xff] %v1285_v8 }
   0x6   :  { %13 = vsyncpa [#allocation6], 0  ;;  %1169 = vmatpush3.bf16.msk.msra.mxu0 %vm1336_vm2, %v1164_v3  ;;  %v25_v10 = vld [vmem:[%s1547_s0 + $0x8] sm:$0xff]  ;;  %1172 = vmatpush3.bf16.msra.mxu1 %v1358_v9  ;;  %v1373_v11 = vld [vmem:[%s1549_s2 + $0x10] sm:$0xf]  ;;  %vm201_vm5 = vcmask 1043456  }
   0x7   :  { %1179 = vmatprep.subr.bf16.mxu0 %v1284_v6  ;;  %1096 = vmatprep.subr.mxu1 %v1285_v8  ;;  %v195_v12 = vld [vmem:[%s1551_s4] sm:$0xff]  ;;  %vm197_vm6 = vcmask 162816   ;;  %vm175_vm7 = vcmask 244736   ;;  %vm276_vm8 = vcmask 244896   ;;  %v26_v23 = vld [vmem:[%s1547_s0 + $0x10] sm:$0xff]  ;;  %v27_v24 = vld [vmem:[%s1547_s0 + $0x18] sm:$0xff] }
   0x8   :  { %v1398_v13 = vld [vmem:[%s1550_s3] ss:$0 sm:$0xff]  ;;  %s1287_s15 = smov 108   ;;  %v29_v41 = vld [vmem:[%s1547_s0 + $0x28] sm:$0xff]  ;;  %v30_v42 = vld [vmem:[%s1547_s0 + $0x30] sm:$0xff] }
   0x9   :  { %1081 = vmatmul.mubr.msk.f32.vlgmr.msra.gmra.mrb[0].mxu0 %vm41_vm3, %v25_v10  ;;  %v28_v40 = vld [vmem:[%s1547_s0 + $0x20] sm:$0xff]  ;;  %v31_v43 = vld [vmem:[%s1547_s0 + $0x38] sm:$0xff]  ;;  %s1288_s0 = smov [#allocation5]  }
   0xa   :  { %1181 = vmatpush3.bf16.msra.mxu0 %v1358_v9  ;;  %1097 = vmatpush3.msk.msra.mxu1 %vm201_vm5, %v1373_v11  ;;  %s996_s24 = sshll.u32 %s1288_s0, 4  ;;  %s997_s24 = int_to_ptr.vmem [resolvable:$true] %s996_s24 }
   0xb   :  { %1123 = vmatprep.subr.mxu0 %v1285_v8  ;;  %1099 = vmatmul.mubr.msk.f32.vlgmr.msra.gmra.mrb[0].mxu1 %vm197_vm6, %v195_v12  ;;  %s1235_s25 = scalar_lea.vmem %s997_s24, 128  ;;  %p1240_p1 = scmp.lt.s32.totalorder %s997_s24, %s997_s24 }
   0xc   :  { %1173 = vmatprep.subr.bf16.mxu1 %v1284_v6  ;;  %1107 = vmatprep.mubr.msk.f32.mxu1 %vm1286_vm4, %v1285_v8  ;;  %p1236_p0 = scmp.ne.s32.totalorder %s997_s24, %s1235_s25  ;;  %p1241_p2 = scmp.lt.s32.totalorder %s1235_s25, %s1235_s25 }
   0xd   :  { %1175 = vmatpush3.bf16.msra.mxu1 %v1358_v9  ;;  %1083 = vmatprep.mubr.msk.f32.mxu0 %vm41_vm3, %v26_v23 }
   0xe   :  { %1105 = vmatprep.subr.mxu1 %v1285_v8  ;;  %1124 = vmatpush3.msk.msra.mxu0 %vm201_vm5, %v1373_v11  ;;  %p1242_p3 = por %p1241_p2, %p1240_p1 }
   0xf   :  { %1185 = vmatprep.subr.bf16.mxu0 %v1284_v6  ;;  %1084 = vmatmul.mubr.msk.f32.gmra.mrb[2].mxu0 %vm41_vm3, %v27_v24 }
  0x10   :  { %1086 = vmatprep.mubr.msk.f32.mxu0 %vm41_vm3, %v28_v40  ;;  %p1243_p4 = pnand %p1242_p3, %p1236_p0 }
  0x11   :  { %1106 = vmatpush3.msk.msra.mxu1 %vm201_vm5, %v1373_v11 }
  0x12   :  { %1176 = vmatprep.subr.bf16.mxu1 %v1284_v6 }
  0x13   :  { %1087 = vmatmul.mubr.msk.f32.gmra.mrb[4].mxu0 %vm41_vm3, %v29_v41 }
  0x14   :  { %1089 = vmatprep.mubr.msk.f32.mxu0 %vm41_vm3, %v30_v42 }
  0x17   :  { %1090 = vmatmul.mubr.msk.f32.gmra.mrb[6].mxu0 %vm41_vm3, %v31_v43 }
  0x18   :  { %1125 = vmatprep.mubr.msk.f32.mxu0 %vm1286_vm4, %v1285_v8 }
  0xdc   :  { %v1082_v14 = vpop.f32.mrb[0].mxu0 }
  0xdd   :  { %v142_v15 = vadd.f32 %v1082_v14, %v1398_v13  ;;  %v136_v16 = vpop.f32.mrb[1].mxu0 }
  0xde   :  { %v137_v17 = vadd.f32 %v1398_v13, %v136_v16  ;;  %v271_v18 = vpop.f32.mrb[0].mxu1 }
  0xdf   :  { %177 = vst.msk [vmem:[#allocation2 + $0x8] sm:$0xff] %vm175_vm7, %v142_v15  ;;  %v1100_v19 = vpop.f32.mrb[1].mxu1 }
  0xe0   :  { %176 = vst.msk [vmem:[#allocation2] sm:$0xff] %vm175_vm7, %v137_v17 }
  0xe2   :  { %v1085_v34 = vpop.f32.mrb[2].mxu0 }
  0xe3   :  { %v152_v35 = vadd.f32 %v1085_v34, %v1398_v13  ;;  %v146_v36 = vpop.f32.mrb[3].mxu0 }
  0xe4   :  { %v147_v37 = vadd.f32 %v1398_v13, %v146_v36 }
  0xe5   :  { %179 = vst.msk [vmem:[#allocation2 + $0x18] sm:$0xff] %vm175_vm7, %v152_v35 }
  0xe6   :  { %v298_v29 = vld [vmem:[#allocation2 + $0x8] sm:$0xff]  ;;  %178 = vst.msk [vmem:[#allocation2 + $0x10] sm:$0xff] %vm175_vm7, %v147_v37  ;;  %v1088_v59 = vpop.f32.mrb[4].mxu0 }
  0xe7   :  { %v196_v20 = vld [vmem:[#allocation2] sm:$0xff]  ;;  %v156_v60 = vpop.f32.mrb[5].mxu0  ;;  %v162_v61 = vadd.f32 %v1088_v59, %v1398_v13 }
  0xe8   :  { %v275_v21 = vadd.f32 %v271_v18, %v196_v20  ;;  %v157_v62 = vadd.f32 %v1398_v13, %v156_v60 }
  0xe9   :  { %181 = vst.msk [vmem:[#allocation2 + $0x28] sm:$0xff] %vm175_vm7, %v162_v61 }
  0xea   :  { %1108 = vmatmul.mubr.msk.f32.vlgmr.msra.gmra.mrb[2].mxu1 %vm197_vm6, %v275_v21  ;;  %v277_v22 = vsel %vm276_vm8, %v275_v21, -inf  ;;  %180 = vst.msk [vmem:[#allocation2 + $0x20] sm:$0xff] %vm175_vm7, %v157_v62  ;;  %v1091_v63 = vpop.f32.mrb[6].mxu0 }
  0xeb   :  { %278 = vmax.xlane.f32.xlu0 %v277_v22  ;;  %1178 = vmatpush3.bf16.msra.mxu1 %v1358_v9  ;;  %v166_v0 = vpop.f32.mrb[7].mxu0  ;;  %v172_v1 = vadd.f32 %v1091_v63, %v1398_v13 }
  0xec   :  { %1114 = vmatprep.subr.mxu1 %v1285_v8  ;;  %1116 = vmatprep.mubr.msk.f32.mxu1 %vm1286_vm4, %v1285_v8  ;;  %v167_v2 = vadd.f32 %v1398_v13, %v166_v0  ;;  %v492_v12 = vld [vmem:[#allocation2 + $0x18] sm:$0xff] }
  0xed   :  { %v395_v49 = vld [vmem:[#allocation2 + $0x10] sm:$0xff]  ;;  %183 = vst.msk [vmem:[#allocation2 + $0x38] sm:$0xff] %vm175_vm7, %v172_v1 }
  0xee   :  { %182 = vst.msk [vmem:[#allocation2 + $0x30] sm:$0xff] %vm175_vm7, %v167_v2 }
  0xef   :  { %1115 = vmatpush3.msk.msra.mxu1 %vm201_vm5, %v1373_v11 }
  0xf0   :  { %1182 = vmatprep.subr.bf16.mxu1 %v1284_v6  ;;  %v686_v34 = vld [vmem:[#allocation2 + $0x28] sm:$0xff] }
  0xf1   :  { %v589_v24 = vld [vmem:[#allocation2 + $0x20] sm:$0xff] }
  0xf4   :  { %v880_v41 = vld [vmem:[#allocation2 + $0x38] sm:$0xff] }
 0x178   :  { %v279_v25 = vpop.xlane.xlu0 %278 }
 0x179   :  { %v280_v26 = vsub.f32 %v275_v21, %v279_v25 }
 0x17b   :  { %v281_v27 = vmul.f32 1.442695, %v280_v26 }
 0x17d   :  { %1203 = vpow2.f32 %v281_v27 }
 0x187   :  { %v1204_v28 = vpop.eup %1203 }
 0x188   :  { %284 = vrot.lane.b32.xlu0 %v1204_v28, %s1287_s15 }
 0x1bd   :  { %v368_v30 = vpop.f32.mrb[2].mxu1 }
 0x1be   :  { %v372_v31 = vadd.f32 %v368_v30, %v298_v29  ;;  %v1109_v32 = vpop.f32.mrb[3].mxu1 }
 0x1c0   :  { %1117 = vmatmul.mubr.msk.f32.vlgmr.msra.gmra.mrb[4].mxu1 %vm197_vm6, %v372_v31  ;;  %v373_v33 = vsel %vm276_vm8, %v372_v31, -inf }
 0x1c1   :  { %374 = vmax.xlane.f32.xlu1 %v373_v33  ;;  %1184 = vmatpush3.bf16.msra.mxu1 %v1358_v9 }
 0x1c2   :  { %1132 = vmatprep.subr.mxu1 %v1285_v8  ;;  %1134 = vmatprep.mubr.msk.f32.mxu1 %vm1286_vm4, %v1285_v8 }
 0x1c5   :  { %1133 = vmatpush3.msk.msra.mxu1 %vm201_vm5, %v1373_v11 }
 0x1c6   :  { %1188 = vmatprep.subr.bf16.mxu1 %v1284_v6 }
 0x1fa   :  { %v285_v38 = vpop.permute.xlu0 %284 }
 0x1fb   :  { %v287_v39 = vsel %vm41_vm3, %v285_v38, 0.0  ;;  %v783_v38 = vld [vmem:[#allocation2 + $0x30] sm:$0xff] }
 0x1fc   :  { %288 = vadd.xlane.f32.xlu1 %v287_v39 }
 0x24e   :  { %v375_v44 = vpop.xlane.xlu1 %374 }
 0x24f   :  { %v376_v45 = vsub.f32 %v372_v31, %v375_v44 }
 0x251   :  { %v377_v46 = vmul.f32 1.442695, %v376_v45 }
 0x253   :  { %1205 = vpow2.f32 %v377_v46 }
 0x25d   :  { %v1206_v47 = vpop.eup %1205 }
 0x25e   :  { %380 = vrot.lane.b32.xlu0 %v1206_v47, %s1287_s15 }
 0x289   :  { %v289_v48 = vpop.xlane.xlu1 %288 }
 0x28a   :  { %1207 = vlog2.f32 %v289_v48 }
 0x293   :  { %v465_v50 = vpop.f32.mrb[4].mxu1 }
 0x294   :  { %v1208_v51 = vpop.eup %1207  ;;  %v469_v52 = vadd.f32 %v465_v50, %v395_v49  ;;  %v1118_v53 = vpop.f32.mrb[5].mxu1 }
 0x295   :  { %v291_v54 = vmul.f32 0.6931472, %v1208_v51 }
 0x296   :  { %1126 = vmatmul.mubr.msk.f32.vlgmr.msra.gmra.mrb[8].mxu0 %vm197_vm6, %v469_v52  ;;  %v470_v55 = vsel %vm276_vm8, %v469_v52, -inf }
 0x297   :  { %471 = vmax.xlane.f32.xlu0 %v470_v55  ;;  %v292_v56 = vsub.f32 %v280_v26, %v291_v54  ;;  %1187 = vmatpush3.bf16.msra.mxu0 %v1358_v9 }
 0x298   :  { %1141 = vmatprep.subr.mxu0 %v1285_v8  ;;  %1143 = vmatprep.mubr.msk.f32.mxu0 %vm1286_vm4, %v1285_v8 }
 0x299   :  { %294 = vrot.lane.b32.xlu1 %v292_v56, %s1287_s15 }
 0x29b   :  { %1142 = vmatpush3.msk.msra.mxu0 %vm201_vm5, %v1373_v11 }
 0x29c   :  { %1191 = vmatprep.subr.bf16.mxu0 %v1284_v6 }
 0x2d0   :  { %v381_v57 = vpop.permute.xlu0 %380 }
 0x2d1   :  { %v383_v58 = vsel %vm41_vm3, %v381_v57, 0.0 }
 0x2d2   :  { %384 = vadd.xlane.f32.xlu0 %v383_v58 }
 0x30b   :  { %v295_v3 = vpop.permute.xlu1 %294 }
 0x30c   :  { %297 = vst.msk [vmem:[#allocation3] sm:$0xff] %vm41_vm3, %v295_v3 }
 0x324   :  { %v472_v4 = vpop.xlane.xlu0 %471 }
 0x325   :  { %v473_v5 = vsub.f32 %v469_v52, %v472_v4 }
 0x327   :  { %v474_v6 = vmul.f32 1.442695, %v473_v5 }
 0x329   :  { %1209 = vpow2.f32 %v474_v6 }
 0x333   :  { %v1210_v7 = vpop.eup %1209 }
 0x334   :  { %477 = vrot.lane.b32.xlu0 %v1210_v7, %s1287_s15 }
 0x35f   :  { %v385_v10 = vpop.xlane.xlu0 %384 }
 0x360   :  { %1211 = vlog2.f32 %v385_v10 }
 0x369   :  { %v562_v14 = vpop.f32.mrb[8].mxu0 }
 0x36a   :  { %v1212_v15 = vpop.eup %1211  ;;  %v566_v13 = vadd.f32 %v562_v14, %v492_v12  ;;  %v1127_v16 = vpop.f32.mrb[9].mxu0 }
 0x36b   :  { %v387_v17 = vmul.f32 0.6931472, %v1212_v15 }
 0x36c   :  { %1135 = vmatmul.mubr.msk.f32.vlgmr.msra.gmra.mrb[6].mxu1 %vm197_vm6, %v566_v13  ;;  %v567_v18 = vsel %vm276_vm8, %v566_v13, -inf }
 0x36d   :  { %568 = vmax.xlane.f32.xlu0 %v567_v18  ;;  %v388_v19 = vsub.f32 %v376_v45, %v387_v17  ;;  %1190 = vmatpush3.bf16.msra.mxu1 %v1358_v9 }
 0x36e   :  { %1150 = vmatprep.subr.mxu1 %v1285_v8  ;;  %1152 = vmatprep.mubr.msk.f32.mxu1 %vm1286_vm4, %v1285_v8 }
 0x36f   :  { %390 = vrot.lane.b32.xlu1 %v388_v19, %s1287_s15 }
 0x371   :  { %1151 = vmatpush3.msk.msra.mxu1 %vm201_vm5, %v1373_v11 }
 0x3a6   :  { %v478_v20 = vpop.permute.xlu0 %477 }
 0x3a7   :  { %v480_v21 = vsel %vm41_vm3, %v478_v20, 0.0 }
 0x3a8   :  { %481 = vadd.xlane.f32.xlu1 %v480_v21 }
 0x3e1   :  { %v391_v22 = vpop.permute.xlu1 %390 }
 0x3e2   :  { %394 = vst.msk [vmem:[#allocation3 + $0x8] sm:$0xff] %vm41_vm3, %v391_v22 }
 0x3fa   :  { %v569_v32 = vpop.xlane.xlu0 %568 }
 0x3fb   :  { %v570_v45 = vsub.f32 %v566_v13, %v569_v32 }
 0x3fd   :  { %v571_v47 = vmul.f32 1.442695, %v570_v45 }
 0x435   :  { %v482_v23 = vpop.xlane.xlu1 %481 }
 0x436   :  { %1213 = vlog2.f32 %v482_v23 }
 0x437   :  { %1215 = vpow2.f32 %v571_v47 }
 0x43f   :  { %v659_v25 = vpop.f32.mrb[6].mxu1 }
 0x440   :  { %v1214_v26 = vpop.eup %1213  ;;  %v663_v27 = vadd.f32 %v659_v25, %v589_v24  ;;  %v1136_v28 = vpop.f32.mrb[7].mxu1 }
 0x441   :  { %v484_v29 = vmul.f32 0.6931472, %v1214_v26  ;;  %v1216_v48 = vpop.eup %1215 }
 0x442   :  { %1144 = vmatmul.mubr.msk.f32.vlgmr.msra.gmra.mrb[10].mxu0 %vm197_vm6, %v663_v27  ;;  %v664_v30 = vsel %vm276_vm8, %v663_v27, -inf }
 0x443   :  { %665 = vmax.xlane.f32.xlu1 %v664_v30  ;;  %v485_v31 = vsub.f32 %v473_v5, %v484_v29  ;;  %1193 = vmatpush3.bf16.msra.mxu0 %v1358_v9 }
 0x444   :  { %1159 = vmatprep.subr.mxu0 %v1285_v8  ;;  %1161 = vmatprep.mubr.msk.f32.mxu0 %vm1286_vm4, %v1285_v8 }
 0x445   :  { %487 = vrot.lane.b32.xlu0 %v485_v31, %s1287_s15 }
 0x447   :  { %1160 = vmatpush3.msk.msra.mxu0 %vm201_vm5, %v1373_v11 }
 0x4b7   :  { %v488_v33 = vpop.permute.xlu0 %487 }
 0x4b8   :  { %491 = vst.msk [vmem:[#allocation3 + $0x10] sm:$0xff] %vm41_vm3, %v488_v33 }
 0x4d0   :  { %v666_v49 = vpop.xlane.xlu1 %665 }
 0x4d1   :  { %v667_v55 = vsub.f32 %v663_v27, %v666_v49 }
 0x4d3   :  { %v668_v56 = vmul.f32 1.442695, %v667_v55 }
 0x515   :  { %v756_v35 = vpop.f32.mrb[10].mxu0 }
 0x516   :  { %v760_v36 = vadd.f32 %v756_v35, %v686_v34  ;;  %v1145_v37 = vpop.f32.mrb[11].mxu0 }
 0x518   :  { %1153 = vmatmul.mubr.msk.f32.vlgmr.msra.gmra.mrb[8].mxu1 %vm197_vm6, %v760_v36  ;;  %v761_v9 = vsel %vm276_vm8, %v760_v36, -inf }
 0x519   :  { %762 = vmax.xlane.f32.xlu1 %v761_v9 }
 0x5a6   :  { %v763_v50 = vpop.xlane.xlu1 %762 }
 0x5a7   :  { %v764_v1 = vsub.f32 %v760_v36, %v763_v50 }
 0x5a9   :  { %v765_v2 = vmul.f32 1.442695, %v764_v1 }
 0x5eb   :  { %v853_v8 = vpop.f32.mrb[8].mxu1 }
 0x5ec   :  { %v857_v39 = vadd.f32 %v853_v8, %v783_v38  ;;  %v1154_v40 = vpop.f32.mrb[9].mxu1 }
 0x5ee   :  { %1162 = vmatmul.mubr.msk.f32.vlgmr.msra.gmra.mrb[12].mxu0 %vm197_vm6, %v857_v39  ;;  %v858_v11 = vsel %vm276_vm8, %v857_v39, -inf }
 0x5ef   :  { %859 = vmax.xlane.f32.xlu0 %v858_v11 }
 0x67c   :  { %v860_v61 = vpop.xlane.xlu0 %859 }
 0x67d   :  { %v861_v5 = vsub.f32 %v857_v39, %v860_v61 }
 0x67f   :  { %v862_v6 = vmul.f32 1.442695, %v861_v5 }
 0x6c1   :  { %v950_v42 = vpop.f32.mrb[12].mxu0 }
 0x6c2   :  { %v954_v43 = vadd.f32 %v950_v42, %v880_v41  ;;  %v1163_v44 = vpop.f32.mrb[13].mxu0 }
 0x6c4   :  { %977 = vst.msk [vmem:[#allocation5] sm:$0xff] %vm197_vm6, %v954_v43  ;;  %v955_v46 = vsel %vm276_vm8, %v954_v43, -inf }
 0x6c5   :  { %956 = vmax.xlane.f32.xlu1 %v955_v46 }
 0x6d6   :  { %574 = vrot.lane.b32.xlu1 %v1216_v48, %s1287_s15 }
 0x752   :  { %v957_v51 = vpop.xlane.xlu1 %956 }
 0x753   :  { %v958_v7 = vsub.f32 %v954_v43, %v957_v51 }
 0x755   :  { %v959_v10 = vmul.f32 1.442695, %v958_v7 }
 0x756   :  { %v575_v52 = vpop.permute.xlu1 %574 }
 0x757   :  { %v577_v53 = vsel %vm41_vm3, %v575_v52, 0.0 }
 0x758   :  { %578 = vadd.xlane.f32.xlu1 %v577_v53 }
 0x7e5   :  { %v579_v54 = vpop.xlane.xlu1 %578 }
 0x7e6   :  { %1217 = vlog2.f32 %v579_v54 }
 0x7e7   :  { %1219 = vpow2.f32 %v668_v56 }
 0x7e8   :  { %1221 = vpow2.f32 %v765_v2 }
 0x7f0   :  { %v1218_v57 = vpop.eup %1217 }
 0x7f1   :  { %v581_v58 = vmul.f32 0.6931472, %v1218_v57  ;;  %v1220_v60 = vpop.eup %1219 }
 0x7f2   :  { %v1222_v3 = vpop.eup %1221 }
 0x7f3   :  { %v582_v59 = vsub.f32 %v570_v45, %v581_v58 }
 0x7f5   :  { %584 = vrot.lane.b32.xlu0 %v582_v59, %s1287_s15 }
 0x7f9   :  { %671 = vrot.lane.b32.xlu0 %v1220_v60, %s1287_s15 }
 0x867   :  { %v585_v62 = vpop.permute.xlu0 %584 }
 0x868   :  { %588 = vst.msk [vmem:[#allocation3 + $0x18] sm:$0xff] %vm41_vm3, %v585_v62 }
 0x86b   :  { %v672_v63 = vpop.permute.xlu0 %671 }
 0x86c   :  { %v674_v0 = vsel %vm41_vm3, %v672_v63, 0.0 }
 0x86d   :  { %675 = vadd.xlane.f32.xlu0 %v674_v0 }
 0x883   :  { %768 = vrot.lane.b32.xlu0 %v1222_v3, %s1287_s15 }
 0x8fa   :  { %v676_v4 = vpop.xlane.xlu0 %675 }
 0x8fb   :  { %1223 = vlog2.f32 %v676_v4 }
 0x8fc   :  { %1225 = vpow2.f32 %v862_v6 }
 0x8fd   :  { %1227 = vpow2.f32 %v959_v10 }
 0x8fe   :  { %v769_v17 = vpop.permute.xlu0 %768 }
 0x8ff   :  { %v771_v18 = vsel %vm41_vm3, %v769_v17, 0.0 }
 0x905   :  { %v1224_v12 = vpop.eup %1223 }
 0x906   :  { %v678_v14 = vmul.f32 0.6931472, %v1224_v12  ;;  %v1226_v13 = vpop.eup %1225 }
 0x907   :  { %v1228_v16 = vpop.eup %1227 }
 0x908   :  { %v679_v15 = vsub.f32 %v667_v55, %v678_v14 }
 0x90a   :  { %681 = vrot.lane.b32.xlu1 %v679_v15, %s1287_s15 }
 0x90e   :  { %865 = vrot.lane.b32.xlu1 %v1226_v13, %s1287_s15 }
 0x912   :  { %962 = vrot.lane.b32.xlu1 %v1228_v16, %s1287_s15 }
 0x936   :  { %772 = vadd.xlane.f32.xlu1 %v771_v18 }
 0x97c   :  { %v682_v19 = vpop.permute.xlu1 %681 }
 0x97d   :  { %685 = vst.msk [vmem:[#allocation3 + $0x20] sm:$0xff] %vm41_vm3, %v682_v19 }
 0x980   :  { %v866_v20 = vpop.permute.xlu1 %865 }
 0x981   :  { %v868_v26 = vsel %vm41_vm3, %v866_v20, 0.0 }
 0x984   :  { %v963_v21 = vpop.permute.xlu1 %962 }
 0x985   :  { %v965_v27 = vsel %vm41_vm3, %v963_v21, 0.0 }
 0x9c3   :  { %v773_v22 = vpop.xlane.xlu1 %772 }
 0x9c4   :  { %1229 = vlog2.f32 %v773_v22 }
 0x9ce   :  { %v1230_v23 = vpop.eup %1229 }
 0x9cf   :  { %v775_v24 = vmul.f32 0.6931472, %v1230_v23 }
 0x9d1   :  { %v776_v25 = vsub.f32 %v764_v1, %v775_v24 }
 0x9d3   :  { %778 = vrot.lane.b32.xlu0 %v776_v25, %s1287_s15 }
 0x9f2   :  { %869 = vadd.xlane.f32.xlu0 %v868_v26 }
 0x9f6   :  { %966 = vadd.xlane.f32.xlu0 %v965_v27 }
 0xa45   :  { %v779_v28 = vpop.permute.xlu0 %778 }
 0xa46   :  { %782 = vst.msk [vmem:[#allocation3 + $0x28] sm:$0xff] %vm41_vm3, %v779_v28 }
 0xa7f   :  { %v870_v29 = vpop.xlane.xlu0 %869 }
 0xa80   :  { %1231 = vlog2.f32 %v870_v29 }
 0xa83   :  { %v967_v30 = vpop.xlane.xlu0 %966 }
 0xa84   :  { %1233 = vlog2.f32 %v967_v30 }
 0xa85   :  { %1246 = shalt.err (!%p1243_p4)
}
 0xa86   :  { %s1247_s28 = scalar_lea.hbm %s1553_s6, 128 }
 0xa87   :  { %p1248_p5 = scmp.ne.s32.totalorder %s1553_s6, %s1247_s28  ;;  %p1251_p6 = scmp.lt.u32.totalorder %s1247_s28, %s1553_s6 }
 0xa89   :  { %p1253_p7 = pnand %p1251_p6, %p1248_p5 }
 0xa8b   :  { %1256 = shalt.err (!%p1253_p7)
}
 0xa8c   :  { %999 = dma.vmem_to_hbm [thread:$0]  %s997_s24, 128, %s1553_s6, [#allocation6]   ;;  %v1232_v31 = vpop.eup %1231 }
 0xa8d   :  { %v872_v32 = vmul.f32 0.6931472, %v1232_v31  ;;  %s1289_s10 = smov [#allocation3]  }
 0xa8e   :  { %v1234_v34 = vpop.eup %1233  ;;  %s983_s11 = sshll.u32 %s1289_s10, 4  ;;  %s984_s11 = int_to_ptr.vmem [resolvable:$true] %s983_s11 }
 0xa8f   :  { %v873_v33 = vsub.f32 %v861_v5, %v872_v32  ;;  %v969_v35 = vmul.f32 0.6931472, %v1234_v34  ;;  %s1257_s6 = scalar_lea.vmem %s984_s11, 1024  ;;  %p1262_p9 = scmp.lt.s32.totalorder %s984_s11, %s984_s11 }
 0xa90   :  { %p1258_p8 = scmp.ne.s32.totalorder %s984_s11, %s1257_s6  ;;  %p1263_p10 = scmp.lt.s32.totalorder %s1257_s6, %s1257_s6 }
 0xa91   :  { %875 = vrot.lane.b32.xlu1 %v873_v33, %s1287_s15  ;;  %v970_v36 = vsub.f32 %v958_v7, %v969_v35 }
 0xa92   :  { %p1264_p11 = por %p1263_p10, %p1262_p9 }
 0xa93   :  { %972 = vrot.lane.b32.xlu0 %v970_v36, %s1287_s15 }
 0xa94   :  { %p1265_p12 = pnand %p1264_p11, %p1258_p8 }
 0xb03   :  { %v876_v37 = vpop.permute.xlu1 %875 }
 0xb04   :  { %879 = vst.msk [vmem:[#allocation3 + $0x30] sm:$0xff] %vm41_vm3, %v876_v37 }
 0xb05   :  { %v973_v9 = vpop.permute.xlu0 %972 }
 0xb06   :  { %976 = vst.msk [vmem:[#allocation3 + $0x38] sm:$0xff] %vm41_vm3, %v973_v9 }
 0xb07   :  { %1268 = shalt.err (!%p1265_p12)
}
 0xb08   :  { %s1269_s3 = scalar_lea.hbm %s1552_s5, 1024 }
 0xb09   :  { %p1270_p13 = scmp.ne.s32.totalorder %s1552_s5, %s1269_s3  ;;  %p1273_p0 = scmp.lt.u32.totalorder %s1269_s3, %s1552_s5 }
 0xb0b   :  { %p1275_p1 = pnand %p1273_p0, %p1270_p13 }
 0xb0d   :  { %1278 = shalt.err (!%p1275_p1)
}
 0xb0e   :  { %s1290_s16 = smov 128   ;;  %s1291_s17 = smov 8  }
 0xb0f   :  { %989 = dma.vmem_to_hbm [thread:$0]  %s984_s11, 1024, %s1552_s5, [#allocation4], %s1290_s16, %s1290_s16, %s1291_s17  }
 0xb10   :  { %1279 = dma.done.wait [#allocation4], 1024  }
 0xb11   :  { %1280 = vsyncadd [#allocation4], 4294966272 }
 0xb12   :  { %1281 = dma.done.wait [#allocation6], 128  }
 0xb13   :  { %1282 = vsyncadd [#allocation6], 4294967168 }
 0xb14   :  { %1006 = vsyncpa [#allocation4], 1 }
 0xb15   :  { %1007 = vsyncpa [#allocation6], 1 }

</bundles_post_ra>
